<compile_context>
chip_gen: v7x
topology: tpu7x:2x2x1
jax: 0.10.0
libtpu: 0.0.40
codegen_flags: <defaults>
</compile_context>

<pallas_src>
import functools

import jax
import jax.numpy as jnp
from jax.experimental import pallas as pl
from jax.experimental.pallas import tpu as pltpu

_EPS = 1e-8  # matches torch.nn.CosineSimilarity default eps


def _simsiam_loss_kernel(p1_ref, p2_ref, z1_ref, z2_ref, out_ref, *,
                         batch, tile_b, needs_mask):
    """One batch tile: partial sum of cosine(p1, z2) + cosine(p2, z1)."""
    # Upcast once (inputs may be bf16); all math in f32.
    p1 = p1_ref[...].astype(jnp.float32)
    p2 = p2_ref[...].astype(jnp.float32)
    z1 = z1_ref[...].astype(jnp.float32)
    z2 = z2_ref[...].astype(jnp.float32)

    def cosine(a, b):
        # Per-row cosine similarity along the feature axis (dim=1).
        dot = jnp.sum(a * b, axis=1, keepdims=True)     # (TB, 1)
        na2 = jnp.sum(a * a, axis=1, keepdims=True)     # (TB, 1)
        nb2 = jnp.sum(b * b, axis=1, keepdims=True)     # (TB, 1)
        # dot / (max(||a||,eps) * max(||b||,eps)).  Per-factor clamp avoids
        # overflowing na2*nb2 in f32 and uses the EUP rsqrt (no divide).
        return (dot
                * jax.lax.rsqrt(jnp.maximum(na2, _EPS * _EPS))
                * jax.lax.rsqrt(jnp.maximum(nb2, _EPS * _EPS)))

    c = cosine(p1, z2) + cosine(p2, z1)                 # (TB, 1)

    # Lane-dense, (8,128)-aligned output block; every element holds the partial.
    out_ref[...] = jnp.broadcast_to(jnp.sum(c), out_ref.shape)

    if needs_mask:
        # Static: only emitted when B % tile_b != 0.  Only the final grid step
        # pays for the iota/compare/select; it overwrites the unmasked partial.
        i = pl.program_id(0)

        @pl.when(i == pl.num_programs(0) - 1)
        def _():
            row = i * tile_b + jax.lax.broadcasted_iota(jnp.int32, (tile_b, 1), 0)
            cm = jnp.where(row < batch, c, 0.0)
            out_ref[...] = jnp.broadcast_to(jnp.sum(cm), out_ref.shape)


def _vmem_capacity_bytes():
    try:
        return int(pltpu.get_tpu_info().vmem_capacity_bytes)
    except Exception:
        return 64 * 1024 * 1024  # conservative fallback: v7x per-TensorCore VMEM


def _choose_tile_b(batch, dim, itemsize, input_vmem_budget):
    """Largest legal batch tile whose live VMEM footprint fits the budget."""
    # Per batch row held live in VMEM:
    #   * 4 input streams x 2 pipeline buffers in the native dtype
    #   * ~6 rows of f32 temporaries (4 whole-block upcasts + live products)
    bytes_per_row = 4 * 2 * dim * itemsize + 6 * dim * 4
    tb = input_vmem_budget // max(bytes_per_row, 1)
    tb = int(max(8, (tb // 8) * 8))          # multiple of 8 sublanes
    if batch <= 8:
        return batch                          # block == full array dim (legal)
    if batch <= tb:
        # Never emit a single-tile grid: >=2 tiles gives DMA/compute overlap
        # and lets ("parallel",) shard the batch across v7x's two TensorCores.
        half = -(-batch // 2)                 # cdiv(batch, 2)
        return min(tb, ((half + 7) // 8) * 8)
    return tb                                 # VMEM is the only bound (no row cap)


def simsiam_loss(p1, p2, z1, z2, *, tile_b=None, vmem_limit_bytes=None):
    """SimSiam loss: -(mean cos(p1,z2) + mean cos(p2,z1)) / 2.

    Inputs are (B, D).  Feeding bf16 inputs halves HBM traffic (the kernel
    upcasts to f32 internally), which is the biggest end-to-end lever since
    this kernel is HBM-bandwidth bound on every TPU generation.
    """
    B, D = p1.shape
    assert p2.shape == (B, D) and z1.shape == (B, D) and z2.shape == (B, D)
    itemsize = jnp.dtype(p1.dtype).itemsize

    if vmem_limit_bytes is None:
        # ~48 MiB on v7x (64 MiB physical), ~96 MiB on v5e/v6e (128 MiB physical):
        # leaves headroom for the output double-buffer and Mosaic scratch.
        vmem_limit_bytes = min(int(0.75 * _vmem_capacity_bytes()),
                               96 * 1024 * 1024)

    if tile_b is None:
        input_budget = max(vmem_limit_bytes - (1 << 20), 1 << 20)
        tile_b = _choose_tile_b(B, D, itemsize, input_budget)
    else:
        # Sanitize user-supplied tile: (8,128) rule needs tile_b % 8 == 0 or
        # tile_b == B (full-dim block).
        tile_b = min(int(tile_b), B)
        if tile_b < B:
            tile_b = max(8, ((tile_b + 7) // 8) * 8)

    num_tiles = pl.cdiv(B, tile_b)
    needs_mask = (B % tile_b) != 0

    in_spec = pl.BlockSpec((tile_b, D), lambda i: (i, 0))
    out_spec = pl.BlockSpec((1, 8, 128), lambda i: (i, 0, 0))

    kernel = functools.partial(_simsiam_loss_kernel,
                               batch=B, tile_b=tile_b, needs_mask=needs_mask)

    cost = pl.CostEstimate(
        flops=12 * B * D,                       # 3 mul + 3 add per elem, 2 cosines
        transcendentals=4 * B,                  # 2 rsqrt per row per cosine
        bytes_accessed=4 * B * D * itemsize + num_tiles * 8 * 128 * 4,
    )

    partials = pl.pallas_call(
        kernel,
        out_shape=jax.ShapeDtypeStruct((num_tiles, 8, 128), jnp.float32),
        grid=(num_tiles,),
        in_specs=[in_spec, in_spec, in_spec, in_spec],
        out_specs=out_spec,
        compiler_params=pltpu.CompilerParams(
            dimension_semantics=("parallel",),
            vmem_limit_bytes=vmem_limit_bytes,
        ),
        cost_estimate=cost,
    )(p1, p2, z1, z2)

    # Tiny finalize in plain JAX (every element of a tile's block is identical).
    return -jnp.sum(partials[:, 0, 0]) / (2.0 * B)


def simsiam_loss_ref(p1, p2, z1, z2):
    # Pure-JAX reference mirroring torch.nn.CosineSimilarity(dim=1) semantics.
    def cosine(a, b):
        a = a.astype(jnp.float32)
        b = b.astype(jnp.float32)
        dot = jnp.sum(a * b, axis=1)
        na = jnp.linalg.norm(a, axis=1)
        nb = jnp.linalg.norm(b, axis=1)
        return dot / jnp.maximum(na * nb, _EPS)

    return -(jnp.mean(cosine(p1, z2)) + jnp.mean(cosine(p2, z1))) * 0.5


if __name__ == "__main__":
    key = jax.random.PRNGKey(0)
    k1, k2, k3, k4 = jax.random.split(key, 4)
    B, D = 12, 128  # small demo; B not a multiple of 8 to exercise masking
    p1 = jax.random.normal(k1, (B, D), dtype=jnp.float32)
    p2 = jax.random.normal(k2, (B, D), dtype=jnp.float32)
    z1 = jax.random.normal(k3, (B, D), dtype=jnp.float32)
    z2 = jax.random.normal(k4, (B, D), dtype=jnp.float32)

    ref = jax.block_until_ready(simsiam_loss_ref(p1, p2, z1, z2))

    # Auto tiling: splits into >=2 tiles (8 + padded 4) -> pipeline + mask path.
    loss_auto = jax.block_until_ready(simsiam_loss(p1, p2, z1, z2))
    assert jnp.allclose(loss_auto, ref, atol=1e-5, rtol=1e-5), (loss_auto, ref)

    # Forced small tile: exercises the user-supplied-tile sanitization path.
    loss_tiled = jax.block_until_ready(simsiam_loss(p1, p2, z1, z2, tile_b=8))
    assert jnp.allclose(loss_tiled, ref, atol=1e-5, rtol=1e-5), (loss_tiled, ref)

    # bf16 inputs (recommended caller contract: halves HBM traffic).
    p1b, p2b = p1.astype(jnp.bfloat16), p2.astype(jnp.bfloat16)
    z1b, z2b = z1.astype(jnp.bfloat16), z2.astype(jnp.bfloat16)
    ref_b = jax.block_until_ready(simsiam_loss_ref(p1b, p2b, z1b, z2b))
    loss_b = jax.block_until_ready(simsiam_loss(p1b, p2b, z1b, z2b))
    assert jnp.allclose(loss_b, ref_b, atol=1e-4, rtol=1e-4), (loss_b, ref_b)

    print("KERNEL_OK")
</pallas_src>

<mosaic_0001>
module attributes {stable_mosaic.version = 11 : i64} {
  func.func @_simsiam_loss_kernel(%arg0: i32, %arg1: memref<8x128xf32, #tpu.memory_space<vmem>>, %arg2: memref<8x128xf32, #tpu.memory_space<vmem>>, %arg3: memref<8x128xf32, #tpu.memory_space<vmem>>, %arg4: memref<8x128xf32, #tpu.memory_space<vmem>>, %arg5: memref<1x8x128xf32, #tpu.memory_space<vmem>>) attributes {dimension_semantics = [#tpu.dimension_semantics<parallel>], iteration_bounds = array<i64: 2>, scalar_prefetch = 0 : i64, scratch_operands = 0 : i64, tpu.core_type = #tpu.core_type<tc>, window_params = [{transform_indices = @transform_0, window_bounds = array<i64: 8, 128>}, {transform_indices = @transform_1, window_bounds = array<i64: 8, 128>}, {transform_indices = @transform_2, window_bounds = array<i64: 8, 128>}, {transform_indices = @transform_3, window_bounds = array<i64: 8, 128>}, {transform_indices = @transform_4, window_bounds = array<i64: 1, 8, 128>}]} {
    %c0 = arith.constant 0 : index
    %c0_0 = arith.constant 0 : index
    %0 = vector.load %arg1[%c0, %c0_0] : memref<8x128xf32, #tpu.memory_space<vmem>>, vector<8x128xf32>
    %c0_1 = arith.constant 0 : index
    %c0_2 = arith.constant 0 : index
    %1 = vector.load %arg2[%c0_1, %c0_2] : memref<8x128xf32, #tpu.memory_space<vmem>>, vector<8x128xf32>
    %c0_3 = arith.constant 0 : index
    %c0_4 = arith.constant 0 : index
    %2 = vector.load %arg3[%c0_3, %c0_4] : memref<8x128xf32, #tpu.memory_space<vmem>>, vector<8x128xf32>
    %c0_5 = arith.constant 0 : index
    %c0_6 = arith.constant 0 : index
    %3 = vector.load %arg4[%c0_5, %c0_6] : memref<8x128xf32, #tpu.memory_space<vmem>>, vector<8x128xf32>
    %4 = arith.mulf %0, %3 : vector<8x128xf32>
    %cst = arith.constant dense<0.000000e+00> : vector<8xf32>
    %5 = vector.multi_reduction <add>, %4, %cst [1] : vector<8x128xf32> to vector<8xf32>
    %6 = vector.shape_cast %5 : vector<8xf32> to vector<8x1xf32>
    %7 = arith.mulf %0, %0 : vector<8x128xf32>
    %cst_7 = arith.constant dense<0.000000e+00> : vector<8xf32>
    %8 = vector.multi_reduction <add>, %7, %cst_7 [1] : vector<8x128xf32> to vector<8xf32>
    %9 = vector.shape_cast %8 : vector<8xf32> to vector<8x1xf32>
    %10 = arith.mulf %3, %3 : vector<8x128xf32>
    %cst_8 = arith.constant dense<0.000000e+00> : vector<8xf32>
    %11 = vector.multi_reduction <add>, %10, %cst_8 [1] : vector<8x128xf32> to vector<8xf32>
    %12 = vector.shape_cast %11 : vector<8xf32> to vector<8x1xf32>
    %cst_9 = arith.constant 1.000000e-16 : f32
    %13 = vector.broadcast %cst_9 : f32 to vector<8x1xf32>
    %14 = arith.maximumf %9, %13 : vector<8x1xf32>
    %15 = math.rsqrt %14 : vector<8x1xf32>
    %16 = arith.mulf %6, %15 : vector<8x1xf32>
    %cst_10 = arith.constant 1.000000e-16 : f32
    %17 = vector.broadcast %cst_10 : f32 to vector<8x1xf32>
    %18 = arith.maximumf %12, %17 : vector<8x1xf32>
    %19 = math.rsqrt %18 : vector<8x1xf32>
    %20 = arith.mulf %16, %19 : vector<8x1xf32>
    %21 = arith.mulf %1, %2 : vector<8x128xf32>
    %cst_11 = arith.constant dense<0.000000e+00> : vector<8xf32>
    %22 = vector.multi_reduction <add>, %21, %cst_11 [1] : vector<8x128xf32> to vector<8xf32>
    %23 = vector.shape_cast %22 : vector<8xf32> to vector<8x1xf32>
    %24 = arith.mulf %1, %1 : vector<8x128xf32>
    %cst_12 = arith.constant dense<0.000000e+00> : vector<8xf32>
    %25 = vector.multi_reduction <add>, %24, %cst_12 [1] : vector<8x128xf32> to vector<8xf32>
    %26 = vector.shape_cast %25 : vector<8xf32> to vector<8x1xf32>
    %27 = arith.mulf %2, %2 : vector<8x128xf32>
    %cst_13 = arith.constant dense<0.000000e+00> : vector<8xf32>
    %28 = vector.multi_reduction <add>, %27, %cst_13 [1] : vector<8x128xf32> to vector<8xf32>
    %29 = vector.shape_cast %28 : vector<8xf32> to vector<8x1xf32>
    %cst_14 = arith.constant 1.000000e-16 : f32
    %30 = vector.broadcast %cst_14 : f32 to vector<8x1xf32>
    %31 = arith.maximumf %26, %30 : vector<8x1xf32>
    %32 = math.rsqrt %31 : vector<8x1xf32>
    %33 = arith.mulf %23, %32 : vector<8x1xf32>
    %cst_15 = arith.constant 1.000000e-16 : f32
    %34 = vector.broadcast %cst_15 : f32 to vector<8x1xf32>
    %35 = arith.maximumf %29, %34 : vector<8x1xf32>
    %36 = math.rsqrt %35 : vector<8x1xf32>
    %37 = arith.mulf %33, %36 : vector<8x1xf32>
    %38 = arith.addf %20, %37 : vector<8x1xf32>
    %39 = vector.shape_cast %38 : vector<8x1xf32> to vector<1x8x1xf32>
    %cst_16 = arith.constant dense<0.000000e+00> : vector<1xf32>
    %40 = vector.multi_reduction <add>, %39, %cst_16 [1, 2] : vector<1x8x1xf32> to vector<1xf32>
    %41 = vector.shape_cast %40 : vector<1xf32> to vector<1x1x1xf32>
    %42 = vector.extract %41[0, 0, 0] : f32 from vector<1x1x1xf32>
    %43 = vector.broadcast %42 : f32 to vector<1x8x128xf32>
    %c0_17 = arith.constant 0 : index
    %c0_18 = arith.constant 0 : index
    %c0_19 = arith.constant 0 : index
    %44 = vector.load %arg5[%c0_17, %c0_18, %c0_19] : memref<1x8x128xf32, #tpu.memory_space<vmem>>, vector<1x8x128xf32>
    tpu.vector_store %arg5[%c0_17, %c0_18, %c0_19], %43 {strides = array<i32>} : memref<1x8x128xf32, #tpu.memory_space<vmem>>, vector<1x8x128xf32>,
    %c1_i32 = arith.constant 1 : i32
    %45 = arith.cmpi eq, %arg0, %c1_i32 : i32
    %46 = arith.extui %45 : i1 to i32
    %c0_i32 = arith.constant 0 : i32
    %47 = arith.cmpi ne, %46, %c0_i32 : i32
    scf.if %47 {
      %c8_i32 = arith.constant 8 : i32
      %48 = arith.muli %arg0, %c8_i32 : i32
      %49 = tpu.iota {dimensions = array<i32: 0>} : vector<8x1xi32>
      %50 = vector.broadcast %48 : i32 to vector<8x1xi32>
      %51 = arith.addi %50, %49 : vector<8x1xi32>
      %c12_i32 = arith.constant 12 : i32
      %52 = vector.broadcast %c12_i32 : i32 to vector<8x1xi32>
      %53 = arith.cmpi slt, %51, %52 : vector<8x1xi32>
      %cst_20 = arith.constant 0.000000e+00 : f32
      %54 = vector.broadcast %cst_20 : f32 to vector<8x1xf32>
      %55 = arith.select %53, %38, %54 : vector<8x1xi1>, vector<8x1xf32>
      %56 = vector.shape_cast %55 : vector<8x1xf32> to vector<1x8x1xf32>
      %cst_21 = arith.constant dense<0.000000e+00> : vector<1xf32>
      %57 = vector.multi_reduction <add>, %56, %cst_21 [1, 2] : vector<1x8x1xf32> to vector<1xf32>
      %58 = vector.shape_cast %57 : vector<1xf32> to vector<1x1x1xf32>
      %59 = vector.extract %58[0, 0, 0] : f32 from vector<1x1x1xf32>
      %60 = vector.broadcast %59 : f32 to vector<1x8x128xf32>
      %c0_22 = arith.constant 0 : index
      %c0_23 = arith.constant 0 : index
      %c0_24 = arith.constant 0 : index
      %61 = vector.load %arg5[%c0_22, %c0_23, %c0_24] : memref<1x8x128xf32, #tpu.memory_space<vmem>>, vector<1x8x128xf32>
      tpu.vector_store %arg5[%c0_22, %c0_23, %c0_24], %60 {strides = array<i32>} : memref<1x8x128xf32, #tpu.memory_space<vmem>>, vector<1x8x128xf32>,
    } else {
    }
    return
  }
  func.func @transform_0(%arg0: i32) -> (i32, i32) {
    %c0_i32 = arith.constant 0 : i32
    %c0_i32_0 = arith.constant 0 : i32
    return %arg0, %c0_i32 : i32, i32
  }
  func.func @transform_1(%arg0: i32) -> (i32, i32) {
    %c0_i32 = arith.constant 0 : i32
    %c0_i32_0 = arith.constant 0 : i32
    return %arg0, %c0_i32 : i32, i32
  }
  func.func @transform_2(%arg0: i32) -> (i32, i32) {
    %c0_i32 = arith.constant 0 : i32
    %c0_i32_0 = arith.constant 0 : i32
    return %arg0, %c0_i32 : i32, i32
  }
  func.func @transform_3(%arg0: i32) -> (i32, i32) {
    %c0_i32 = arith.constant 0 : i32
    %c0_i32_0 = arith.constant 0 : i32
    return %arg0, %c0_i32 : i32, i32
  }
  func.func @transform_4(%arg0: i32) -> (i32, i32, i32) {
    %c0_i32 = arith.constant 0 : i32
    %c0_i32_0 = arith.constant 0 : i32
    %c0_i32_1 = arith.constant 0 : i32
    return %arg0, %c0_i32, %c0_i32_0 : i32, i32, i32
  }
}

</mosaic_0001>

<bundles_post_ra>
// kernel: tpu_custom_call.1
= control target key start
LH: loop header
LB: loop body
LE: loop exit
PB: predicated region body
PF: predicated region fallthrough
CT: control target
= control target key end

     0   :  { %s1128_s0 = inlined_call_operand.hbm [shape: f32[12,128], index: 0, kind: input, shape index: {}]   ;;  %s1129_s1 = inlined_call_operand.hbm [shape: f32[12,128], index: 1, kind: input, shape index: {}]   ;;  %s1130_s2 = inlined_call_operand.hbm [shape: f32[12,128], index: 2, kind: input, shape index: {}]   ;;  %s1131_s3 = inlined_call_operand.hbm [shape: f32[12,128], index: 3, kind: input, shape index: {}]   ;;  %s1132_s4 = inlined_call_operand.hbm [shape: f32[2,8,128], index: 4, kind: output, shape index: {}]  }
   0x1   :  { %1138 = sst [smem:[#allocation17_spill]] %s1129_s1 }
   0x2   :  { %9 = vsyncpa [#allocation3], 0 }
   0x3   :  { %11 = vsyncpa [#allocation3 + $0x1], 0 }
   0x4   :  { %12 = vsyncpa [#allocation6], 0 }
   0x5   :  { %14 = vsyncpa [#allocation6 + $0x1], 0 }
   0x6   :  { %15 = vsyncpa [#allocation9], 0 }
   0x7   :  { %17 = vsyncpa [#allocation9 + $0x1], 0 }
   0x8   :  { %18 = vsyncpa [#allocation4], 0 }
   0x9   :  { %20 = vsyncpa [#allocation4 + $0x1], 0  ;;  %s864_s15 = smov 0   ;;  %s866_s16 = smov 0  }
   0xa   :  { %s868_s17 = smov 0   ;;  %s870_s18 = smov 0  }
   0xb LB: > { %1139 = sst [smem:[#allocation15_spill]] %s828_s17  ;;  %s885_s19 = sadd.s32 4294967295, %s832_s18   ;;  %s832_s18 = sphi %s870_s18, %s1161_s18   ;;  %s828_s17 = sphi %s868_s17, %s1158_s17   ;;  %s824_s16 = sphi %s866_s16, %s1160_s16   ;;  %s820_s15 = sphi %s864_s15, %s1159_s15  }
   0xc   : > { %s542_s20 = sadd.s32 4294967294, %s832_s18   ;;  %s889_s21 = sadd.s32 1, %s832_s18  }
   0xd   : > { %s33_s22 = sadd.s32 1, %s828_s17  ;;  %s30_s23 = ssub.s32 %s832_s18, %s889_s21 }
   0xe   : > { %p40_p0 = scmp.ne.s32.totalorder %s828_s17, %s824_s16  ;;  %p31_p1 = scmp.eq.s32.totalorder %s30_s23, 0 }
   0xf   : > { %p41_p2 = scmp.eq.s32.totalorder %s832_s18, 0  ;;  %p46_p3 = scmp.ne.s32.totalorder %s824_s16, %s820_s15 }
  0x10   : > { %p47_p4 = scmp.eq.s32.totalorder %s885_s19, 0  ;;  %p148_p7 = scmp.eq.s32.totalorder %s885_s19, 1 }
  0x11   : > { %s901_s24 = scalar_select %p31_p1, %s828_s17, %s33_s22  }
  0x12   : > { %p42_p5 = por %p41_p2, %p40_p0  ;;  %p903_p6 = por %p47_p4, %p46_p3 }
  0x13   : > { %1140 = sst [smem:[#allocation16_spill]] %s901_s24  ;;  %p154_p8 = scmp.eq.s32.totalorder %s542_s20, 1 }
  0x14   : > { %s1141_s25 = scalar_select %p903_p6, 1, 0 }
  0x15   : > { %p596_p10 = scmp.lt.s32.totalorder %s832_s18, 2  ;;  %p910_p11 = por %p148_p7, %p40_p0 }
  0x16   : > { %p914_p12 = por %p154_p8, %p46_p3  ;;  %s919_s28 = sand.u32 1, %s828_s17  }
  0x17   : > { %s1142_s26 = scalar_select %p910_p11, 1, 0 }
  0x18   : > { %s1143_s27 = scalar_select %p914_p12, 1, 0 }
  0x19   : > { %s922_s29 = sshll.u32 %s832_s18, 7  ;;  %s925_s30 = sshll.u32 %s919_s28, 3 }
  0x1a   : > { %p927_p13 = pnand %p596_p10, %p42_p5  ;;  %s192_s6 = sand.u32 1, %s832_s18  }
  0x1b   : > { %s1145_s1 = sld [smem:[#allocation17_spill]]  ;;  %s196_s10 = scalar_lea.vmem [#allocation5], %s925_s30 }
  0x1c   : > { %s1144_s5 = scalar_select %p927_p13, 1, 0 }
  0x1d   : > { %s203_s11 = sshll.u32 %s196_s10, 4  ;;  %s942_s12 = scalar_lea.sflag [#allocation6], %s192_s6  ;;  %s939_s11 = int_to_ptr.vmem [resolvable:$true] %s203_s11 }
  0x1e   : > { %p948_p2 = pneg %p927_p13 }
  0x21   : > { %s936_s9 = scalar_lea.hbm %s1145_s1, %s922_s29  ;;  %s643_s23 = scalar_lea.hbm %s1145_s1, 256 }
  0x22   : > { %s638_s13 = scalar_lea.hbm %s936_s9, 128  ;;  %p644_p5 = scmp.lt.u32.totalorder %s936_s9, %s1145_s1 }
  0x23   : > { %p639_p1 = scmp.ne.s32.totalorder %s936_s9, %s638_s13  ;;  %p645_p7 = scmp.lt.u32.totalorder %s643_s23, %s638_s13 }
  0x24   : > { %p647_p10 = scmp.lt.u32.totalorder %s638_s13, %s936_s9 }
  0x25   : > { %p641_p3 = pnand %p948_p2, %p639_p1  ;;  %p646_p8 = por %p645_p7, %p644_p5 }
  0x27   : > { %p642_p4 = pneg %p641_p3  ;;  %p648_p9 = por %p647_p10, %p646_p8 }
  0x29   : > { %p649_p0 = pnand %p648_p9, %p642_p4 }
  0x2b   : > { %652 = shalt.err (!%p649_p0)
}
  0x2c   : > { %s653_s6 = scalar_lea.vmem %s939_s11, 128  ;;  %s834_s10 = smov [#allocation5]  }
  0x2d   : > { %p654_p1 = scmp.ne.s32.totalorder %s939_s11, %s653_s6  ;;  %s658_s20 = sshll.u32 %s834_s10, 4  ;;  %s659_s20 = int_to_ptr.vmem [resolvable:$false] %s658_s20 }
  0x2e   : > { %s660_s22 = scalar_lea.vmem %s659_s20, 256  ;;  %p661_p11 = scmp.lt.s32.totalorder %s939_s11, %s659_s20 }
  0x2f   : > { %p656_p3 = pnand %p654_p1, %p948_p2  ;;  %p662_p6 = scmp.lt.s32.totalorder %s660_s22, %s653_s6 }
  0x31   : > { %p657_p12 = pneg %p656_p3  ;;  %p663_p5 = por %p662_p6, %p661_p11 }
  0x33   : > { %p664_p7 = pnand %p663_p5, %p657_p12 }
  0x35   : > { %667 = shalt.err (!%p664_p7)
}
  0x36   : > { %585 = dma.hbm_to_vmem [thread:$0]  (!%p927_p13), %s936_s9, 128, %s939_s11, %s942_s12  }
  0x37   : > { %p244_p9 = scmp.lt.s32.totalorder %s832_s18, 3  ;;  %s977_s7 = scalar_lea.hbm %s1128_s0, %s922_s29 }
  0x38   : > { %p1147_p6 = scmp.ge.s32.totalorder %s832_s18, 1  ;;  %s178_s6 = scalar_lea.vmem [#allocation2], %s925_s30 }
  0x39   : > { %s185_s10 = sshll.u32 %s178_s6, 4  ;;  %s175_s20 = scalar_lea.sflag [#allocation3], %s919_s28  ;;  %s186_s10 = int_to_ptr.vmem [resolvable:$true] %s185_s10 }
  0x3a   : > { %p981_p11 = pnand %p1147_p6, %p244_p9  ;;  %s668_s9 = scalar_lea.hbm %s977_s7, 128 }
  0x3b   : > { %p669_p12 = scmp.ne.s32.totalorder %s977_s7, %s668_s9  ;;  %s673_s13 = scalar_lea.hbm %s1128_s0, 256 }
  0x3c   : > { %s1148_s8 = scalar_select %p981_p11, 1, 0 }
  0x3d   : > { %p671_p0 = pnand %p669_p12, %p948_p2  ;;  %p674_p8 = scmp.lt.u32.totalorder %s977_s7, %s1128_s0 }
  0x3e   : > { %p675_p10 = scmp.lt.u32.totalorder %s673_s13, %s668_s9  ;;  %p677_p3 = scmp.lt.u32.totalorder %s668_s9, %s977_s7 }
  0x3f   : > { %p672_p4 = pneg %p671_p0 }
  0x40   : > { %p676_p1 = por %p675_p10, %p674_p8 }
  0x42   : > { %p678_p5 = por %p677_p3, %p676_p1 }
  0x44   : > { %p679_p7 = pnand %p678_p5, %p672_p4 }
  0x46   : > { %682 = shalt.err (!%p679_p7)
}
  0x47   : > { %s683_s6 = scalar_lea.vmem %s186_s10, 128  ;;  %s835_s24 = smov [#allocation2]  }
  0x48   : > { %p684_p9 = scmp.ne.s32.totalorder %s186_s10, %s683_s6  ;;  %s688_s17 = sshll.u32 %s835_s24, 4  ;;  %s689_s17 = int_to_ptr.vmem [resolvable:$false] %s688_s17 }
  0x49   : > { %s690_s11 = scalar_lea.vmem %s689_s17, 256  ;;  %p691_p0 = scmp.lt.s32.totalorder %s186_s10, %s689_s17 }
  0x4a   : > { %p686_p6 = pnand %p684_p9, %p948_p2  ;;  %p692_p11 = scmp.lt.s32.totalorder %s690_s11, %s683_s6 }
  0x4c   : > { %p687_p12 = pneg %p686_p6  ;;  %p693_p13 = por %p692_p11, %p691_p0 }
  0x4e   : > { %p694_p8 = pnand %p693_p13, %p687_p12 }
  0x50   : > { %697 = shalt.err (!%p694_p8)
}
  0x51   : > { %p1149_p10 = scmp.ne.s32.totalorder %s1144_s5, 0  ;;  %s1008_s22 = scalar_lea.hbm %s1130_s2, %s922_s29 }
  0x52   : > { %s214_s17 = scalar_lea.vmem [#allocation7], %s925_s30  ;;  %s698_s13 = scalar_lea.hbm %s1008_s22, 128 }
  0x53   : > { %582 = dma.hbm_to_vmem [thread:$0]  (!%p1149_p10), %s977_s7, 128, %s186_s10, %s175_s20  }
  0x54   : > { %s221_s24 = sshll.u32 %s214_s17, 4  ;;  %p699_p13 = scmp.ne.s32.totalorder %s1008_s22, %s698_s13  ;;  %s222_s24 = int_to_ptr.vmem [resolvable:$true] %s221_s24 }
  0x55   : > { %s703_s7 = scalar_lea.hbm %s1130_s2, 256  ;;  %p704_p1 = scmp.lt.u32.totalorder %s1008_s22, %s1130_s2 }
  0x56   : > { %p701_p11 = pnand %p699_p13, %p948_p2  ;;  %p705_p3 = scmp.lt.u32.totalorder %s703_s7, %s698_s13 }
  0x57   : > { %p707_p7 = scmp.lt.u32.totalorder %s698_s13, %s1008_s22 }
  0x58   : > { %p702_p4 = pneg %p701_p11  ;;  %p706_p5 = por %p705_p3, %p704_p1 }
  0x5a   : > { %p708_p9 = por %p707_p7, %p706_p5 }
  0x5c   : > { %p709_p6 = pnand %p708_p9, %p702_p4 }
  0x5e   : > { %712 = shalt.err (!%p709_p6)
}
  0x5f   : > { %s713_s11 = scalar_lea.vmem %s222_s24, 128  ;;  %s836_s1 = smov [#allocation7]  }
  0x60   : > { %p714_p12 = scmp.ne.s32.totalorder %s222_s24, %s713_s11  ;;  %s718_s9 = sshll.u32 %s836_s1, 4  ;;  %s719_s9 = int_to_ptr.vmem [resolvable:$false] %s718_s9 }
  0x61   : > { %s720_s17 = scalar_lea.vmem %s719_s9, 256  ;;  %p721_p13 = scmp.lt.s32.totalorder %s222_s24, %s719_s9 }
  0x62   : > { %p716_p0 = pnand %p714_p12, %p948_p2  ;;  %p722_p11 = scmp.lt.s32.totalorder %s720_s17, %s713_s11 }
  0x64   : > { %p717_p8 = pneg %p716_p0  ;;  %p723_p10 = por %p722_p11, %p721_p13 }
  0x66   : > { %p724_p1 = pnand %p723_p10, %p717_p8 }
  0x68   : > { %727 = shalt.err (!%p724_p1)
}
  0x69   : > { %p1150_p3 = scmp.ne.s32.totalorder %s1144_s5, 0  ;;  %s1033_s6 = scalar_lea.hbm %s1131_s3, %s922_s29 }
  0x6a   : > { %s232_s7 = scalar_lea.vmem [#allocation8], %s925_s30  ;;  %s229_s20 = scalar_lea.sflag [#allocation9], %s919_s28 }
  0x6b   : > { %588 = dma.hbm_to_vmem [thread:$0]  (!%p1150_p3), %s1008_s22, 128, %s222_s24, %s942_s12  }
  0x6c   : > { %s239_s10 = sshll.u32 %s232_s7, 4  ;;  %s728_s11 = scalar_lea.hbm %s1033_s6, 128  ;;  %s240_s10 = int_to_ptr.vmem [resolvable:$true] %s239_s10 }
  0x6d   : > { %p729_p10 = scmp.ne.s32.totalorder %s1033_s6, %s728_s11  ;;  %s733_s22 = scalar_lea.hbm %s1131_s3, 256 }
  0x6e   : > { %p734_p7 = scmp.lt.u32.totalorder %s1033_s6, %s1131_s3  ;;  %p735_p9 = scmp.lt.u32.totalorder %s733_s22, %s728_s11 }
  0x6f   : > { %p731_p4 = pnand %p729_p10, %p948_p2  ;;  %p737_p12 = scmp.lt.u32.totalorder %s728_s11, %s1033_s6 }
  0x70   : > { %p736_p6 = por %p735_p9, %p734_p7 }
  0x71   : > { %p732_p5 = pneg %p731_p4 }
  0x72   : > { %p738_p0 = por %p737_p12, %p736_p6 }
  0x74   : > { %p739_p8 = pnand %p738_p0, %p732_p5 }
  0x76   : > { %742 = shalt.err (!%p739_p8)
}
  0x77   : > { %s743_s28 = scalar_lea.vmem %s240_s10, 128  ;;  %s837_s30 = smov [#allocation8]  }
  0x78   : > { %p744_p13 = scmp.ne.s32.totalorder %s240_s10, %s743_s28  ;;  %s748_s9 = sshll.u32 %s837_s30, 4  ;;  %s749_s9 = int_to_ptr.vmem [resolvable:$false] %s748_s9 }
  0x79   : > { %s750_s17 = scalar_lea.vmem %s749_s9, 256  ;;  %p751_p10 = scmp.lt.s32.totalorder %s240_s10, %s749_s9 }
  0x7a   : > { %p746_p11 = pnand %p744_p13, %p948_p2  ;;  %p752_p4 = scmp.lt.s32.totalorder %s750_s17, %s743_s28 }
  0x7c   : > { %p747_p1 = pneg %p746_p11  ;;  %p753_p3 = por %p752_p4, %p751_p10 }
  0x7e   : > { %p754_p7 = pnand %p753_p3, %p747_p1 }
  0x80   : > { %757 = shalt.err (!%p754_p7)
}
  0x81   : > { %p1151_p9 = scmp.ne.s32.totalorder %s1144_s5, 0  ;;  %p1152_p5 = scmp.ne.s32.totalorder %s1148_s8, 0 }
  0x82   : > { %s1057_s14 = sand.u32 (!%p1152_p5), 1, %s824_s16   ;;  %p1153_p2 = scmp.ne.s32.totalorder (!%p1152_p5), %s1141_s25, 0 }
  0x83   : > { %591 = dma.hbm_to_vmem [thread:$0]  (!%p1151_p9), %s1033_s6, 128, %s240_s10, %s229_s20  }
  0x84   : > { %248 = sbr.rel (%p1152_p5) target bundleno = 550 (0x226), region = 36  ;;  %s1060_s13 = sshll.u32 (!%p1152_p5), %s1057_s14, 3 }
  0x85   : > { %s251_s23 = scalar_lea.sflag (!%p1152_p5), [#allocation3], %s1057_s14  ;;  %s254_s7 = scalar_lea.vmem (!%p1152_p5), [#allocation2], %s1060_s13 }
  0x8b   : > { %803 = dma.done.wait (%p1153_p2), %s251_s23, 128  }
  0x8c   : > { %805 = vsyncadd (%p1153_p2), %s251_s23, 4294967168  ;;  %s259_s5 = sand.u32 1, %s885_s19   ;;  %s263_s6 = scalar_lea.vmem [#allocation5], %s1060_s13 }
  0x8d   : > { %s260_s8 = scalar_lea.sflag [#allocation6], %s259_s5 }
  0x8e   : > { %807 = dma.done.wait (%p1153_p2), %s260_s8, 256  }
  0x8f   : > { %809 = vsyncadd (%p1153_p2), %s260_s8, 4294967040  ;;  %s272_s10 = scalar_lea.vmem [#allocation7], %s1060_s13  ;;  %s278_s20 = scalar_lea.sflag [#allocation9], %s1057_s14 }
  0x90   : > { %s281_s11 = scalar_lea.vmem [#allocation8], %s1060_s13 }
  0x91   : > { %811 = dma.done.wait (%p1153_p2), %s278_s20, 128  }
  0x92   : > { %813 = vsyncadd (%p1153_p2), %s278_s20, 4294967168  ;;  %v321_v0 = vld [vmem:[%s254_s7] sm:$0xff]  ;;  %v324_v1 = vld [vmem:[%s281_s11] sm:$0xff]  ;;  %vm356_vm0 = vcmask 7168   ;;  %s320_s1 = scalar_lea.vmem [#allocation10], %s1060_s13  ;;  %p559_p3 = scmp.ne.s32.totalorder %s885_s19, 1 }
  0x93   : > { %v322_v2 = vld [vmem:[%s263_s6] sm:$0xff]  ;;  %v328_v3 = vmul.f32 %v321_v0, %v321_v0  ;;  %v331_v4 = vmul.f32 %v324_v1, %v324_v1  ;;  %v323_v5 = vld [vmem:[%s272_s10] sm:$0xff]  ;;  %v325_v8 = vmul.f32 %v324_v1, %v321_v0  ;;  %s560_s12 = sshll.u32 (!%p559_p3), %s885_s19, 3  ;;  %v374_v38 = vlaneseq (!%p559_p3) }
  0x94   : > { %v343_v6 = vmul.f32 %v322_v2, %v322_v2  ;;  %v346_v7 = vmul.f32 %v323_v5, %v323_v5  ;;  %v340_v9 = vmul.f32 %v323_v5, %v322_v2  ;;  %v376_v39 = vstv (!%p559_p3), %s560_s12 }
  0x95   : > { %329 = vadd.xlane.f32.xlu0 %v328_v3  ;;  %332 = vadd.xlane.f32.xlu1 %v331_v4  ;;  %v375_v40 = vshrl.u32 (!%p559_p3), %v374_v38, 7 }
  0x97   : > { %v377_v41 = vadd.s32 (!%p559_p3), %v376_v39, %v375_v40 }
  0x99   : > { %344 = vadd.xlane.f32.xlu0 %v343_v6  ;;  %347 = vadd.xlane.f32.xlu1 %v346_v7  ;;  %vm378_vm1 = vcmp.lt.s32.totalorder (!%p559_p3), %v377_v41, 12 }
  0x9d   : > { %326 = vadd.xlane.f32.xlu0 %v325_v8  ;;  %341 = vadd.xlane.f32.xlu1 %v340_v9 }
 0x122   : > { %v330_v10 = vpop.xlane.xlu0 %329  ;;  %v333_v11 = vpop.xlane.xlu1 %332 }
 0x123   : > { %v334_v12 = vmax.f32 %v330_v10, 1e-16  ;;  %v337_v13 = vmax.f32 %v333_v11, 1e-16 }
 0x125   : > { %630 = vrsqrt.f32 %v334_v12 }
 0x126   : > { %v345_v14 = vpop.xlane.xlu0 %344  ;;  %v348_v15 = vpop.xlane.xlu1 %347  ;;  %632 = vrsqrt.f32 %v337_v13 }
 0x127   : > { %v349_v16 = vmax.f32 %v345_v14, 1e-16  ;;  %v352_v17 = vmax.f32 %v348_v15, 1e-16 }
 0x129   : > { %634 = vrsqrt.f32 %v349_v16 }
 0x12a   : > { %636 = vrsqrt.f32 %v352_v17  ;;  %v327_v19 = vpop.xlane.xlu0 %326  ;;  %v342_v20 = vpop.xlane.xlu1 %341 }
 0x12f   : > { %v631_v18 = vpop.eup %630 }
 0x130   : > { %v633_v21 = vpop.eup %632  ;;  %v336_v22 = vmul.f32 %v631_v18, %v327_v19 }
 0x132   : > { %v339_v26 = vmul.f32 %v633_v21, %v336_v22 }
 0x133   : > { %v635_v23 = vpop.eup %634 }
 0x134   : > { %v637_v24 = vpop.eup %636  ;;  %v351_v25 = vmul.f32 %v635_v23, %v342_v20 }
 0x136   : > { %v354_v27 = vmul.f32 %v637_v24, %v351_v25 }
 0x138   : > { %v355_v28 = vadd.f32 %v354_v27, %v339_v26 }
 0x13a   : > { %v357_v29 = vsel %vm356_vm0, %v355_v28, 0.0  ;;  %v379_v42 = vsel (!%p559_p3), %vm378_vm1, %v355_v28, 0.0 }
 0x13b   : > { %358 = vadd.xlane.f32.xlu0 %v357_v29  ;;  %v380_v43 = vsel (!%p559_p3), %vm356_vm0, %v379_v42, 0.0 }
 0x13f   : > { %381 = vadd.xlane.f32.xlu0 (!%p559_p3), %v380_v43 }
 0x1c8   : > { %v359_v30 = vpop.xlane.xlu0 %358 }
 0x1c9   : > { %v360_v31 = vrot.slane %v359_v30, 4 }
 0x1cb   : > { %v361_v32 = vadd.f32 %v360_v31, %v359_v30 }
 0x1cc   : > { %v382_v44 = vpop.xlane.xlu0 (!%p559_p3), %381 }
 0x1cd   : > { %v362_v33 = vrot.slane %v361_v32, 2  ;;  %v383_v45 = vrot.slane (!%p559_p3), %v382_v44, 4 }
 0x1cf   : > { %v363_v34 = vadd.f32 %v362_v33, %v361_v32  ;;  %v384_v46 = vadd.f32 (!%p559_p3), %v383_v45, %v382_v44 }
 0x1d1   : > { %v364_v35 = vrot.slane %v363_v34, 1  ;;  %v385_v47 = vrot.slane (!%p559_p3), %v384_v46, 2 }
 0x1d3   : > { %v365_v36 = vadd.f32 %v364_v35, %v363_v34  ;;  %v386_v48 = vadd.f32 (!%p559_p3), %v385_v47, %v384_v46 }
 0x1d5   : > { %565 = vpush %v365_v36  ;;  %v387_v49 = vrot.slane (!%p559_p3), %v386_v48, 1 }
 0x1d7   : > { %v388_v50 = vadd.f32 (!%p559_p3), %v387_v49, %v386_v48 }
 0x1d9   : > { %567 = vpush (!%p559_p3), %v388_v50 }
 0x202   : > { %372 = sbr.rel (%p559_p3) target bundleno = 525 (0x20d), region = 56 }
 0x206   : > { %s566_s25 = spop %565 }
 0x207   : > { %v367_v37 = vstv %s566_s25 }
 0x208   : > { %368 = vst [vmem:[%s320_s1] sm:$0xff] %v367_v37 }
 0x20a   : > { %s568_s22 = spop %567 }
 0x20b   : > { %v390_v51 = vstv %s568_s22 }
 0x20c   : > { %391 = vst [vmem:[%s320_s1] sm:$0xff] %v390_v51 }
 0x20d PF: > { %s562_s24 = sshll.u32 %s885_s19, 7  ;;  %s406_s9 = sshll.u32 %s320_s1, 4  ;;  %s407_s9 = int_to_ptr.vmem [resolvable:$true] %s406_s9 }
 0x20e   : > { %s1090_s30 = scalar_lea.hbm %s1132_s4, %s562_s24  ;;  %s393_s17 = scalar_lea.sflag [#allocation4], %s1057_s14 }
 0x20f   : > { %s758_s13 = scalar_lea.vmem %s407_s9, 128  ;;  %p1154_p12 = scmp.ne.s32.totalorder %s1142_s26, 0 }
 0x210   : > { %p759_p6 = scmp.ne.s32.totalorder %s407_s9, %s758_s13  ;;  %s838_s23 = smov [#allocation10]  }
 0x211   : > { %s762_s7 = sshll.u32 %s838_s23, 4  ;;  %s763_s7 = int_to_ptr.vmem [resolvable:$false] %s762_s7 }
 0x212   : > { %p760_p0 = pnand %p759_p6, %p1154_p12  ;;  %s764_s5 = scalar_lea.vmem %s763_s7, 256 }
 0x213   : > { %p765_p13 = scmp.lt.s32.totalorder %s407_s9, %s763_s7  ;;  %p766_p11 = scmp.lt.s32.totalorder %s764_s5, %s758_s13 }
 0x214   : > { %p761_p8 = pneg %p760_p0 }
 0x215   : > { %p767_p1 = por %p766_p11, %p765_p13 }
 0x217   : > { %p768_p10 = pnand %p767_p1, %p761_p8 }
 0x219   : > { %771 = shalt.err (!%p768_p10)
}
 0x21a   : > { %s772_s19 = scalar_lea.hbm %s1090_s30, 128  ;;  %s776_s6 = scalar_lea.hbm %s1132_s4, 256 }
 0x21b   : > { %p773_p4 = scmp.ne.s32.totalorder %s1090_s30, %s772_s19  ;;  %p777_p5 = scmp.lt.u32.totalorder %s1090_s30, %s1132_s4 }
 0x21c   : > { %p778_p2 = scmp.lt.u32.totalorder %s776_s6, %s772_s19  ;;  %p780_p6 = scmp.lt.u32.totalorder %s772_s19, %s1090_s30 }
 0x21d   : > { %p774_p7 = pnand %p773_p4, %p1154_p12 }
 0x21e   : > { %p779_p3 = por %p778_p2, %p777_p5 }
 0x21f   : > { %p775_p9 = pneg %p774_p7 }
 0x220   : > { %p781_p0 = por %p780_p6, %p779_p3 }
 0x222   : > { %p782_p8 = pnand %p781_p0, %p775_p9 }
 0x224   : > { %785 = shalt.err (!%p782_p8)
}
 0x225   : > { %577 = dma.vmem_to_hbm [thread:$0]  (%p1154_p12), %s407_s9, 128, %s1090_s30, %s393_s17  }
 0x226 PF: > { %s418_s11 = sand.u32 1, %s820_s15   ;;  %p1155_p13 = scmp.ne.s32.totalorder %s1143_s27, 0 }
 0x227   : > { %p1156_p11 = scmp.ge.s32.totalorder %s832_s18, 2  ;;  %s419_s25 = scalar_lea.sflag [#allocation4], %s418_s11 }
 0x229   : > { %p593_p1 = pnand %p1156_p11, %p1155_p13 }
 0x22b   : > { %815 = dma.done.wait (!%p593_p1), %s419_s25, 128  }
 0x22c   : > { %817 = vsyncadd (!%p593_p1), %s419_s25, 4294967168  ;;  %s1157_s1 = sld [smem:[#allocation15_spill]]  ;;  %s1158_s17 = sld [smem:[#allocation16_spill]] }
 0x22d   : > { %p23_p10 = scmp.ge.s32.totalorder %s889_s21, 4   ;;  %s1159_s15 = smov %s824_s16 }
 0x22e   : > { %s1161_s18 = smov %s889_s21 }
 0x22f   :  { %25 = sbr.rel (!%p23_p10) target bundleno = 11 (0xb), region = 122 }
 0x232   : > { %s1160_s16 = smov %s1157_s1 }
 0x236   :  { %424 = vsyncpa [#allocation3], 1 }
 0x237   :  { %426 = vsyncpa [#allocation3 + $0x1], 1 }
 0x238   :  { %427 = vsyncpa [#allocation6], 1 }
 0x239   :  { %429 = vsyncpa [#allocation6 + $0x1], 1 }
 0x23a   :  { %430 = vsyncpa [#allocation9], 1 }
 0x23b   :  { %432 = vsyncpa [#allocation9 + $0x1], 1 }
 0x23c   :  { %433 = vsyncpa [#allocation4], 1 }
 0x23d   :  { %435 = vsyncpa [#allocation4 + $0x1], 1 }

</bundles_post_ra>
